<compile_context>
chip_gen: v7x
topology: tpu7x:2x2x1
jax: 0.10.0
libtpu: 0.0.40
codegen_flags: <defaults>
</compile_context>

<pallas_src>
import functools

import jax
import jax.numpy as jnp
from jax.experimental import pallas as pl
from jax.experimental.pallas import tpu as pltpu

BN_EPS = 1e-5
_VMEM_LIMIT = 32 * 1024 * 1024  # safe on v5e/v6e (128 MiB phys) and v7x (64 MiB phys)


def _pick_row_tile(N, cap=256):
    """Largest multiple-of-8 row tile <= cap that divides N (else all N rows)."""
    if N <= cap:
        return N
    t = cap - (cap % 8)
    while t >= 8:
        if N % t == 0:
            return t
        t -= 8
    return N


def _gconv_fwd_kernel(w_ref, x_ref, fcw_ref, y_ref, stats_ref):
    """Pass 1: y = sum_j (W_j @ x) @ fcw_j for one (b, row-tile); accumulate BN stats.

    w_ref:     (1, J, tile_n, N)    adjacency operator, j-major layout
    x_ref:     (1, N, Fin)          full x[b] (needed by every row tile)
    fcw_ref:   (J, Fin, nf_out)     fc weight, rearranged in the wrapper
    y_ref:     (1, tile_n, nf_out)  pre-BatchNorm output tile
    stats_ref: (1, 2, nf_out)       [sum_y, sum_y^2], accumulated over the N axis
    """
    J = w_ref.shape[1]
    i = pl.program_id(1)
    cdtype = w_ref.dtype            # f32, or bf16 when use_bf16 (MXU inputs)

    x_b = x_ref[0]                  # (N, Fin)
    y = None
    for j in range(J):              # J is a small static constant -> unrolled
        gm_j = jnp.dot(w_ref[0, j], x_b,
                       preferred_element_type=jnp.float32)        # (tile_n, Fin)
        y_j = jnp.dot(gm_j.astype(cdtype), fcw_ref[j],
                      preferred_element_type=jnp.float32)         # (tile_n, nf_out)
        y = y_j if y is None else y + y_j

    y_ref[0] = y.astype(y_ref.dtype)

    # BatchNorm phase 1: per-feature sum and sum-of-squares, f32 accumulation.
    @pl.when(i == 0)
    def _init_stats():
        stats_ref[...] = jnp.zeros_like(stats_ref)

    part = jnp.concatenate(
        [jnp.sum(y, axis=0, keepdims=True),
         jnp.sum(y * y, axis=0, keepdims=True)], axis=0)          # (2, nf_out)
    stats_ref[...] += part[None]


def _make_bn_apply_kernel(total_rows):
    inv_n = 1.0 / float(total_rows)

    def _bn_apply_kernel(y_ref, stats_ref, gamma_ref, beta_ref, o_ref):
        """Pass 2: normalize one y tile with the global batch statistics (in place)."""
        total = jnp.sum(stats_ref[...], axis=0)                   # (2, nf_out)
        mean = total[0:1] * inv_n                                 # (1, nf_out)
        # Biased variance via E[y^2] - E[y]^2 in f32 (clamp tiny negative round-off).
        var = jnp.maximum(total[1:2] * inv_n - mean * mean, 0.0)
        scale = gamma_ref[...] * jax.lax.rsqrt(var + BN_EPS)      # (1, nf_out)
        bias = beta_ref[...] - mean * scale
        o_ref[...] = y_ref[...] * scale[None] + bias[None]

    return _bn_apply_kernel


@functools.partial(jax.jit, static_argnames=("use_bf16", "w_is_jnn"))
def gconv_pallas(W, x, fc_weight, gamma, beta, *, use_bf16=False, w_is_jnn=False):
    """Gconv forward (bn_bool=True, training-mode batch statistics).

    W:         (B, N, N, J) as in PyTorch, or (B, J, N, N) when w_is_jnn=True.
    x:         (B, N, Fin)
    fc_weight: (nf_out, J*Fin)   nn.Linear weight (bias=False)
    gamma, beta: (nf_out,)       BatchNorm affine parameters
    use_bf16:  cast MXU inputs (W, x, fc weight) to bfloat16 (perf option for
               v6e / v7x); accumulation and BatchNorm stay in f32.
    """
    compute_dtype = jnp.bfloat16 if use_bf16 else jnp.float32

    if w_is_jnn:
        B, J, N, _ = W.shape
        W_g = W.astype(compute_dtype)
    else:
        B, N, _, J = W.shape
        # TODO(synk): this transpose is an extra HBM pass over the dominant tensor;
        # produce W as (B, J, N, N) upstream and pass w_is_jnn=True to eliminate it.
        W_g = jnp.transpose(W, (0, 3, 1, 2)).astype(compute_dtype)  # (B, J, N, N)

    Fin = x.shape[-1]
    nf_out = fc_weight.shape[0]
    assert fc_weight.shape[1] == J * Fin

    # fc weight -> (J, Fin, nf_out): lets the kernel sum over j (no lane concatenate).
    fcw_r = jnp.transpose(fc_weight.reshape(nf_out, J, Fin), (1, 2, 0))
    fcw_r = fcw_r.astype(compute_dtype)

    x_g = x.astype(compute_dtype)
    gamma2 = gamma.reshape(1, nf_out).astype(jnp.float32)
    beta2 = beta.reshape(1, nf_out).astype(jnp.float32)

    tile_n = _pick_row_tile(N)
    n_tiles = N // tile_n
    grid = (B, n_tiles)

    # ---- Pass 1: gmul + fc, plus BatchNorm partial statistics --------------------
    y, stats = pl.pallas_call(
        _gconv_fwd_kernel,
        out_shape=(jax.ShapeDtypeStruct((B, N, nf_out), jnp.float32),
                   jax.ShapeDtypeStruct((B, 2, nf_out), jnp.float32)),
        grid=grid,
        in_specs=[
            pl.BlockSpec((1, J, tile_n, N), lambda b, i: (b, 0, i, 0)),
            pl.BlockSpec((1, N, Fin), lambda b, i: (b, 0, 0)),
            pl.BlockSpec((J, Fin, nf_out), lambda b, i: (0, 0, 0)),
        ],
        out_specs=(
            pl.BlockSpec((1, tile_n, nf_out), lambda b, i: (b, i, 0)),
            pl.BlockSpec((1, 2, nf_out), lambda b, i: (b, 0, 0)),
        ),
        compiler_params=pltpu.CompilerParams(
            dimension_semantics=("parallel", "arbitrary"),
            vmem_limit_bytes=_VMEM_LIMIT),
    )(W_g, x_g, fcw_r)

    # ---- Pass 2: apply BatchNorm (in place on y) ----------------------------------
    out = pl.pallas_call(
        _make_bn_apply_kernel(B * N),
        out_shape=jax.ShapeDtypeStruct((B, N, nf_out), jnp.float32),
        grid=grid,
        in_specs=[
            pl.BlockSpec((1, tile_n, nf_out), lambda b, i: (b, i, 0)),
            pl.BlockSpec((B, 2, nf_out), lambda b, i: (0, 0, 0)),
            pl.BlockSpec((1, nf_out), lambda b, i: (0, 0)),
            pl.BlockSpec((1, nf_out), lambda b, i: (0, 0)),
        ],
        out_specs=pl.BlockSpec((1, tile_n, nf_out), lambda b, i: (b, i, 0)),
        input_output_aliases={0: 0},   # normalize y in place, no extra HBM buffer
        compiler_params=pltpu.CompilerParams(
            dimension_semantics=("parallel", "parallel"),
            vmem_limit_bytes=_VMEM_LIMIT),
    )(y, stats, gamma2, beta2)

    return out


def gconv_reference(W, x, fc_weight, gamma, beta):
    """Pure-JAX reference mirroring the PyTorch forward (bn_bool=True, training)."""
    B, N, _, J = W.shape
    Fin = x.shape[-1]
    gm = jnp.einsum("bnmj,bmf->bnjf", W, x).reshape(B, N, J * Fin)
    y = gm.reshape(-1, J * Fin) @ fc_weight.T
    mean = jnp.mean(y, axis=0, keepdims=True)
    var = jnp.mean((y - mean) ** 2, axis=0, keepdims=True)
    y = (y - mean) / jnp.sqrt(var + BN_EPS)
    y = y * gamma[None, :] + beta[None, :]
    return y.reshape(B, N, -1)


if __name__ == "__main__":
    # Small shapes consistent with the module: J=2, nf_input=4, nf_output=32.
    B, N, Fin, J, nf_out = 2, 8, 4, 2, 32
    num_inputs = J * Fin

    key = jax.random.PRNGKey(0)
    kW, kx, kfc = jax.random.split(key, 3)
    W = jax.random.normal(kW, (B, N, N, J), dtype=jnp.float32)
    x = jax.random.normal(kx, (B, N, Fin), dtype=jnp.float32)

    # Deterministic parameter init (nn.Linear-style uniform bound; BN: gamma=1, beta=0).
    bound = 1.0 / (num_inputs ** 0.5)
    fc_weight = jax.random.uniform(
        kfc, (nf_out, num_inputs), minval=-bound, maxval=bound, dtype=jnp.float32)
    gamma = jnp.ones((nf_out,), dtype=jnp.float32)
    beta = jnp.zeros((nf_out,), dtype=jnp.float32)

    ref = gconv_reference(W, x, fc_weight, gamma, beta)

    # f32 path: exact semantics of the PyTorch module (tight tolerance).
    out = jax.block_until_ready(gconv_pallas(W, x, fc_weight, gamma, beta))
    assert out.shape == (B, N, nf_out)
    assert jnp.allclose(out, ref, atol=1e-4, rtol=1e-4), "f32 mismatch vs reference"

    # bf16 MXU-input path (perf option for v6e/v7x): looser tolerance.
    out_bf16 = jax.block_until_ready(
        gconv_pallas(W, x, fc_weight, gamma, beta, use_bf16=True))
    assert out_bf16.shape == (B, N, nf_out)
    assert jnp.allclose(out_bf16, ref, atol=0.25, rtol=0.25), "bf16 path diverged"

    # TODO(synk): BatchNorm running-stats update / eval mode and the bn_bool=False
    # branch (Linear with bias, no BN) are not modeled.
    print("KERNEL_OK")
</pallas_src>

<mosaic_0001>
module attributes {stable_mosaic.version = 11 : i64} {
  func.func @_bn_apply_kernel(%arg0: i32, %arg1: i32, %arg2: memref<1x8x32xf32, #tpu.memory_space<vmem>>, %arg3: memref<2x2x32xf32, #tpu.memory_space<vmem>>, %arg4: memref<1x32xf32, #tpu.memory_space<vmem>>, %arg5: memref<1x32xf32, #tpu.memory_space<vmem>>, %arg6: memref<1x8x32xf32, #tpu.memory_space<vmem>>) attributes {dimension_semantics = [#tpu.dimension_semantics<parallel>, #tpu.dimension_semantics<parallel>], iteration_bounds = array<i64: 2, 1>, scalar_prefetch = 0 : i64, scratch_operands = 0 : i64, tpu.core_type = #tpu.core_type<tc>, window_params = [{transform_indices = @transform_0, window_bounds = array<i64: 1, 8, 32>}, {pipeline_mode = #tpu.pipeline_mode<synchronous>, transform_indices = @transform_1, window_bounds = array<i64: 2, 2, 32>}, {pipeline_mode = #tpu.pipeline_mode<synchronous>, transform_indices = @transform_2, window_bounds = array<i64: 1, 32>}, {pipeline_mode = #tpu.pipeline_mode<synchronous>, transform_indices = @transform_3, window_bounds = array<i64: 1, 32>}, {transform_indices = @transform_4, window_bounds = array<i64: 1, 8, 32>}]} {
    %c0 = arith.constant 0 : index
    %c0_0 = arith.constant 0 : index
    %c0_1 = arith.constant 0 : index
    %0 = vector.load %arg3[%c0, %c0_0, %c0_1] : memref<2x2x32xf32, #tpu.memory_space<vmem>>, vector<2x2x32xf32>
    %cst = arith.constant dense<0.000000e+00> : vector<2x32xf32>
    %1 = vector.multi_reduction <add>, %0, %cst [0] : vector<2x2x32xf32> to vector<2x32xf32>
    %2 = vector.extract_strided_slice %1 {offsets = [0, 0], sizes = [1, 32], strides = [1, 1]} : vector<2x32xf32> to vector<1x32xf32>
    %cst_2 = arith.constant 6.250000e-02 : f32
    %3 = vector.broadcast %cst_2 : f32 to vector<1x32xf32>
    %4 = arith.mulf %2, %3 : vector<1x32xf32>
    %5 = vector.extract_strided_slice %1 {offsets = [1, 0], sizes = [1, 32], strides = [1, 1]} : vector<2x32xf32> to vector<1x32xf32>
    %cst_3 = arith.constant 6.250000e-02 : f32
    %6 = vector.broadcast %cst_3 : f32 to vector<1x32xf32>
    %7 = arith.mulf %5, %6 : vector<1x32xf32>
    %8 = arith.mulf %4, %4 : vector<1x32xf32>
    %9 = arith.subf %7, %8 : vector<1x32xf32>
    %cst_4 = arith.constant 0.000000e+00 : f32
    %10 = vector.broadcast %cst_4 : f32 to vector<1x32xf32>
    %11 = arith.maximumf %9, %10 : vector<1x32xf32>
    %c0_5 = arith.constant 0 : index
    %c0_6 = arith.constant 0 : index
    %12 = vector.load %arg4[%c0_5, %c0_6] : memref<1x32xf32, #tpu.memory_space<vmem>>, vector<1x32xf32>
    %cst_7 = arith.constant 9.99999974E-6 : f32
    %13 = vector.broadcast %cst_7 : f32 to vector<1x32xf32>
    %14 = arith.addf %11, %13 : vector<1x32xf32>
    %15 = math.rsqrt %14 : vector<1x32xf32>
    %16 = arith.mulf %12, %15 : vector<1x32xf32>
    %c0_8 = arith.constant 0 : index
    %c0_9 = arith.constant 0 : index
    %17 = vector.load %arg5[%c0_8, %c0_9] : memref<1x32xf32, #tpu.memory_space<vmem>>, vector<1x32xf32>
    %18 = arith.mulf %4, %16 : vector<1x32xf32>
    %19 = arith.subf %17, %18 : vector<1x32xf32>
    %c0_10 = arith.constant 0 : index
    %c0_11 = arith.constant 0 : index
    %c0_12 = arith.constant 0 : index
    %20 = vector.load %arg2[%c0_10, %c0_11, %c0_12] : memref<1x8x32xf32, #tpu.memory_space<vmem>>, vector<1x8x32xf32>
    %21 = vector.shape_cast %16 : vector<1x32xf32> to vector<1x1x32xf32>
    %22 = vector.broadcast %21 : vector<1x1x32xf32> to vector<1x8x32xf32>
    %23 = arith.mulf %20, %22 : vector<1x8x32xf32>
    %24 = vector.shape_cast %19 : vector<1x32xf32> to vector<1x1x32xf32>
    %25 = vector.broadcast %24 : vector<1x1x32xf32> to vector<1x8x32xf32>
    %26 = arith.addf %23, %25 : vector<1x8x32xf32>
    %c0_13 = arith.constant 0 : index
    %c0_14 = arith.constant 0 : index
    %c0_15 = arith.constant 0 : index
    %27 = vector.load %arg6[%c0_13, %c0_14, %c0_15] : memref<1x8x32xf32, #tpu.memory_space<vmem>>, vector<1x8x32xf32>
    tpu.vector_store %arg6[%c0_13, %c0_14, %c0_15], %26 {strides = array<i32>} : memref<1x8x32xf32, #tpu.memory_space<vmem>>, vector<1x8x32xf32>,
    return
  }
  func.func @transform_0(%arg0: i32, %arg1: i32) -> (i32, i32, i32) {
    %c0_i32 = arith.constant 0 : i32
    %c0_i32_0 = arith.constant 0 : i32
    return %arg0, %arg1, %c0_i32 : i32, i32, i32
  }
  func.func @transform_1(%arg0: i32, %arg1: i32) -> (i32, i32, i32) {
    %c0_i32 = arith.constant 0 : i32
    %c0_i32_0 = arith.constant 0 : i32
    %c0_i32_1 = arith.constant 0 : i32
    %c0_i32_2 = arith.constant 0 : i32
    return %c0_i32, %c0_i32_0, %c0_i32_1 : i32, i32, i32
  }
  func.func @transform_2(%arg0: i32, %arg1: i32) -> (i32, i32) {
    %c0_i32 = arith.constant 0 : i32
    %c0_i32_0 = arith.constant 0 : i32
    %c0_i32_1 = arith.constant 0 : i32
    return %c0_i32, %c0_i32_0 : i32, i32
  }
  func.func @transform_3(%arg0: i32, %arg1: i32) -> (i32, i32) {
    %c0_i32 = arith.constant 0 : i32
    %c0_i32_0 = arith.constant 0 : i32
    %c0_i32_1 = arith.constant 0 : i32
    return %c0_i32, %c0_i32_0 : i32, i32
  }
  func.func @transform_4(%arg0: i32, %arg1: i32) -> (i32, i32, i32) {
    %c0_i32 = arith.constant 0 : i32
    %c0_i32_0 = arith.constant 0 : i32
    return %arg0, %arg1, %c0_i32 : i32, i32, i32
  }
}

module attributes {stable_mosaic.version = 11 : i64} {
  func.func @_gconv_fwd_kernel(%arg0: i32, %arg1: i32, %arg2: memref<1x2x8x8xf32, #tpu.memory_space<vmem>>, %arg3: memref<1x8x4xf32, #tpu.memory_space<vmem>>, %arg4: memref<2x4x32xf32, #tpu.memory_space<vmem>>, %arg5: memref<1x8x32xf32, #tpu.memory_space<vmem>>, %arg6: memref<1x2x32xf32, #tpu.memory_space<vmem>>) attributes {dimension_semantics = [#tpu.dimension_semantics<parallel>, #tpu.dimension_semantics<arbitrary>], iteration_bounds = array<i64: 2, 1>, scalar_prefetch = 0 : i64, scratch_operands = 0 : i64, tpu.core_type = #tpu.core_type<tc>, window_params = [{transform_indices = @transform_0, window_bounds = array<i64: 1, 2, 8, 8>}, {transform_indices = @transform_1, window_bounds = array<i64: 1, 8, 4>}, {pipeline_mode = #tpu.pipeline_mode<synchronous>, transform_indices = @transform_2, window_bounds = array<i64: 2, 4, 32>}, {transform_indices = @transform_3, window_bounds = array<i64: 1, 8, 32>}, {transform_indices = @transform_4, window_bounds = array<i64: 1, 2, 32>}]} {
    %c0 = arith.constant 0 : index
    %c0_0 = arith.constant 0 : index
    %c0_1 = arith.constant 0 : index
    %0 = vector.load %arg3[%c0, %c0_0, %c0_1] : memref<1x8x4xf32, #tpu.memory_space<vmem>>, vector<1x8x4xf32>
    %1 = vector.shape_cast %0 : vector<1x8x4xf32> to vector<8x4xf32>
    %c0_2 = arith.constant 0 : index
    %c0_3 = arith.constant 0 : index
    %c0_4 = arith.constant 0 : index
    %c0_5 = arith.constant 0 : index
    %2 = vector.load %arg2[%c0_2, %c0_3, %c0_4, %c0_5] : memref<1x2x8x8xf32, #tpu.memory_space<vmem>>, vector<1x1x8x8xf32>
    %3 = vector.shape_cast %2 : vector<1x1x8x8xf32> to vector<8x8xf32>
    %cst = arith.constant dense<0.000000e+00> : vector<8x4xf32>
    %4 = tpu.matmul %3, %1, %cst {dimension_numbers = #tpu.dot_dimension_numbers<[1], [0], [0], [1], [0, 0, 1, 1], [], []>} : vector<8x8xf32>, vector<8x4xf32>, vector<8x4xf32> -> vector<8x4xf32>
    %c0_6 = arith.constant 0 : index
    %c0_7 = arith.constant 0 : index
    %c0_8 = arith.constant 0 : index
    %5 = vector.load %arg4[%c0_6, %c0_7, %c0_8] : memref<2x4x32xf32, #tpu.memory_space<vmem>>, vector<1x4x32xf32>
    %6 = vector.shape_cast %5 : vector<1x4x32xf32> to vector<4x32xf32>
    %cst_9 = arith.constant dense<0.000000e+00> : vector<8x32xf32>
    %7 = tpu.matmul %4, %6, %cst_9 {dimension_numbers = #tpu.dot_dimension_numbers<[1], [0], [0], [1], [0, 0, 1, 1], [], []>} : vector<8x4xf32>, vector<4x32xf32>, vector<8x32xf32> -> vector<8x32xf32>
    %c0_10 = arith.constant 0 : index
    %c1 = arith.constant 1 : index
    %c0_11 = arith.constant 0 : index
    %c0_12 = arith.constant 0 : index
    %8 = vector.load %arg2[%c0_10, %c1, %c0_11, %c0_12] : memref<1x2x8x8xf32, #tpu.memory_space<vmem>>, vector<1x1x8x8xf32>
    %9 = vector.shape_cast %8 : vector<1x1x8x8xf32> to vector<8x8xf32>
    %cst_13 = arith.constant dense<0.000000e+00> : vector<8x4xf32>
    %10 = tpu.matmul %9, %1, %cst_13 {dimension_numbers = #tpu.dot_dimension_numbers<[1], [0], [0], [1], [0, 0, 1, 1], [], []>} : vector<8x8xf32>, vector<8x4xf32>, vector<8x4xf32> -> vector<8x4xf32>
    %c1_14 = arith.constant 1 : index
    %c0_15 = arith.constant 0 : index
    %c0_16 = arith.constant 0 : index
    %11 = vector.load %arg4[%c1_14, %c0_15, %c0_16] : memref<2x4x32xf32, #tpu.memory_space<vmem>>, vector<1x4x32xf32>
    %12 = vector.shape_cast %11 : vector<1x4x32xf32> to vector<4x32xf32>
    %cst_17 = arith.constant dense<0.000000e+00> : vector<8x32xf32>
    %13 = tpu.matmul %10, %12, %cst_17 {dimension_numbers = #tpu.dot_dimension_numbers<[1], [0], [0], [1], [0, 0, 1, 1], [], []>} : vector<8x4xf32>, vector<4x32xf32>, vector<8x32xf32> -> vector<8x32xf32>
    %14 = arith.addf %7, %13 : vector<8x32xf32>
    %c0_18 = arith.constant 0 : index
    %c0_19 = arith.constant 0 : index
    %c0_20 = arith.constant 0 : index
    %15 = vector.load %arg5[%c0_18, %c0_19, %c0_20] : memref<1x8x32xf32, #tpu.memory_space<vmem>>, vector<1x8x32xf32>
    %16 = vector.shape_cast %15 : vector<1x8x32xf32> to vector<8x32xf32>
    %17 = vector.shape_cast %14 : vector<8x32xf32> to vector<1x8x32xf32>
    tpu.vector_store %arg5[%c0_18, %c0_19, %c0_20], %17 {strides = array<i32>} : memref<1x8x32xf32, #tpu.memory_space<vmem>>, vector<1x8x32xf32>,
    %c0_i32 = arith.constant 0 : i32
    %18 = arith.cmpi eq, %arg1, %c0_i32 : i32
    %19 = arith.extui %18 : i1 to i32
    %c0_i32_21 = arith.constant 0 : i32
    %20 = arith.cmpi ne, %19, %c0_i32_21 : i32
    scf.if %20 {
      %cst_30 = arith.constant 0.000000e+00 : f32
      %31 = vector.broadcast %cst_30 : f32 to vector<1x2x32xf32>
      %c0_31 = arith.constant 0 : index
      %c0_32 = arith.constant 0 : index
      %c0_33 = arith.constant 0 : index
      %32 = vector.load %arg6[%c0_31, %c0_32, %c0_33] : memref<1x2x32xf32, #tpu.memory_space<vmem>>, vector<1x2x32xf32>
      tpu.vector_store %arg6[%c0_31, %c0_32, %c0_33], %31 {strides = array<i32>} : memref<1x2x32xf32, #tpu.memory_space<vmem>>, vector<1x2x32xf32>,
    } else {
    }
    %cst_22 = arith.constant dense<0.000000e+00> : vector<32xf32>
    %21 = vector.multi_reduction <add>, %14, %cst_22 [0] : vector<8x32xf32> to vector<32xf32>
    %22 = vector.shape_cast %21 : vector<32xf32> to vector<1x32xf32>
    %23 = arith.mulf %14, %14 : vector<8x32xf32>
    %cst_23 = arith.constant dense<0.000000e+00> : vector<32xf32>
    %24 = vector.multi_reduction <add>, %23, %cst_23 [0] : vector<8x32xf32> to vector<32xf32>
    %25 = vector.shape_cast %24 : vector<32xf32> to vector<1x32xf32>
    %26 = tpu.concatenate %22, %25 in 0 : vector<1x32xf32>, vector<1x32xf32> -> vector<2x32xf32>
    %c0_24 = arith.constant 0 : index
    %c0_25 = arith.constant 0 : index
    %c0_26 = arith.constant 0 : index
    %27 = vector.load %arg6[%c0_24, %c0_25, %c0_26] : memref<1x2x32xf32, #tpu.memory_space<vmem>>, vector<1x2x32xf32>
    %28 = vector.shape_cast %26 : vector<2x32xf32> to vector<1x2x32xf32>
    %29 = arith.addf %27, %28 : vector<1x2x32xf32>
    %c0_27 = arith.constant 0 : index
    %c0_28 = arith.constant 0 : index
    %c0_29 = arith.constant 0 : index
    %30 = vector.load %arg6[%c0_27, %c0_28, %c0_29] : memref<1x2x32xf32, #tpu.memory_space<vmem>>, vector<1x2x32xf32>
    tpu.vector_store %arg6[%c0_27, %c0_28, %c0_29], %29 {strides = array<i32>} : memref<1x2x32xf32, #tpu.memory_space<vmem>>, vector<1x2x32xf32>,
    return
  }
  func.func @transform_0(%arg0: i32, %arg1: i32) -> (i32, i32, i32, i32) {
    %c0_i32 = arith.constant 0 : i32
    %c0_i32_0 = arith.constant 0 : i32
    %c0_i32_1 = arith.constant 0 : i32
    return %arg0, %c0_i32, %arg1, %c0_i32_0 : i32, i32, i32, i32
  }
  func.func @transform_1(%arg0: i32, %arg1: i32) -> (i32, i32, i32) {
    %c0_i32 = arith.constant 0 : i32
    %c0_i32_0 = arith.constant 0 : i32
    %c0_i32_1 = arith.constant 0 : i32
    return %arg0, %c0_i32, %c0_i32_0 : i32, i32, i32
  }
  func.func @transform_2(%arg0: i32, %arg1: i32) -> (i32, i32, i32) {
    %c0_i32 = arith.constant 0 : i32
    %c0_i32_0 = arith.constant 0 : i32
    %c0_i32_1 = arith.constant 0 : i32
    %c0_i32_2 = arith.constant 0 : i32
    return %c0_i32, %c0_i32_0, %c0_i32_1 : i32, i32, i32
  }
  func.func @transform_3(%arg0: i32, %arg1: i32) -> (i32, i32, i32) {
    %c0_i32 = arith.constant 0 : i32
    %c0_i32_0 = arith.constant 0 : i32
    return %arg0, %arg1, %c0_i32 : i32, i32, i32
  }
  func.func @transform_4(%arg0: i32, %arg1: i32) -> (i32, i32, i32) {
    %c0_i32 = arith.constant 0 : i32
    %c0_i32_0 = arith.constant 0 : i32
    %c0_i32_1 = arith.constant 0 : i32
    return %arg0, %c0_i32, %c0_i32_0 : i32, i32, i32
  }
}

</mosaic_0001>

<bundles_post_ra>
// kernel: gconv_pallas.3
= control target key start
LH: loop header
LB: loop body
LE: loop exit
PB: predicated region body
PF: predicated region fallthrough
CT: control target
= control target key end

     0   :  { %9 = vsyncpa [#allocation3], 0  ;;  %s790_s0 = inlined_call_operand.hbm [shape: f32[2,8,32], index: 0, kind: input, shape index: {}, may-alias: {0,4}]   ;;  %s791_s1 = inlined_call_operand.vmem [shape: f32[2,2,32], index: 1, kind: input, shape index: {}]   ;;  %s792_s2 = inlined_call_operand.vmem [shape: f32[1,32], index: 2, kind: input, shape index: {}]   ;;  %s793_s3 = inlined_call_operand.vmem [shape: f32[1,32], index: 3, kind: input, shape index: {}]   ;;  %s794_s4 = inlined_call_operand.hbm [shape: f32[2,8,32], index: 4, kind: output, shape index: {}, may-alias: {0,4}]  }
   0x1   :  { %11 = vsyncpa [#allocation3 + $0x1], 0 }
   0x2   :  { %12 = vsyncpa [#allocation4], 0 }
   0x3   :  { %14 = vsyncpa [#allocation4 + $0x1], 0  ;;  %s599_s15 = smov 0   ;;  %s601_s16 = smov 0  }
   0x4   :  { %s603_s17 = smov 0   ;;  %s605_s18 = smov 0  }
   0x5   :  { %s607_s19 = smov 0   ;;  %s609_s20 = smov 0  }
   0x6 LB: > { %s379_s21 = sadd.s32 4294967295, %s569_s20   ;;  %s380_s22 = sadd.s32 4294967294, %s569_s20   ;;  %s569_s20 = sphi %s609_s20, %s20_s20   ;;  %s565_s19 = sphi %s607_s19, %s810_s19   ;;  %s561_s18 = sphi %s605_s18, %s809_s18   ;;  %s557_s17 = sphi %s603_s17, %s808_s17   ;;  %s553_s16 = sphi %s601_s16, %s807_s16   ;;  %s549_s15 = sphi %s599_s15, %s806_s15  }
   0x7   : > { %s32_s23 = sadd.s32 1, %s565_s19  ;;  %s41_s24 = sadd.s32 1, %s557_s17 }
   0x8   : > { %p34_p0 = scmp.ge.s32.totalorder %s32_s23, 2  ;;  %p48_p1 = scmp.ne.s32.totalorder %s557_s17, %s553_s16 }
   0x9   : > { %p49_p2 = scmp.eq.s32.totalorder %s569_s20, 0  ;;  %p54_p3 = scmp.ne.s32.totalorder %s553_s16, %s549_s15 }
   0xa   : > { %s812_s23 = smov (%p34_p0, %s32_s23), 0  ;;  %p55_p5 = scmp.eq.s32.totalorder %s379_s21, 0 }
   0xb   : > { %p640_p4 = por %p49_p2, %p48_p1  ;;  %s36_s26 = ssub.s32 %s565_s19, %s812_s23 }
   0xc   : > { %p143_p6 = scmp.eq.s32.totalorder %s379_s21, 1  ;;  %p39_p7 = scmp.eq.s32.totalorder %s36_s26, 0 }
   0xd   : > { %p646_p8 = por %p55_p5, %p54_p3  ;;  %p149_p10 = scmp.eq.s32.totalorder %s380_s22, 1 }
   0xe   : > { %p650_p9 = por %p143_p6, %p48_p1  ;;  %p404_p13 = scmp.lt.s32.totalorder %s569_s20, 2 }
   0xf   : > { %s655_s29 = scalar_select %p39_p7, %s557_s17, %s41_s24  }
  0x10   : > { %s798_s28 = scalar_select %p650_p9, 1, 0 }
  0x11   : > { %p657_p11 = por %p149_p10, %p54_p3  ;;  %s178_s5 = sand.u32 1, %s557_s17  }
  0x12   : > { %s383_s6 = sshll.u32 %s178_s5, 3  ;;  %s384_s7 = sshll.u32 %s565_s19, 7 }
  0x13   : > { %s799_s30 = scalar_select %p657_p11, 1, 0 }
  0x14   : > { %s668_s10 = scalar_lea.hbm %s790_s0, %s384_s7  ;;  %s182_s11 = scalar_lea.vmem [#allocation2], %s383_s6 }
  0x15   : > { %s190_s12 = sshll.u32 %s182_s11, 4  ;;  %p674_p0 = pnand %p404_p13, %p640_p4  ;;  %s670_s12 = int_to_ptr.vmem [resolvable:$true] %s190_s12 }
  0x16   : > { %s179_s14 = scalar_lea.sflag [#allocation3], %s178_s5  ;;  %s457_s21 = scalar_lea.hbm %s668_s10, 128 }
  0x17   : > { %p458_p3 = scmp.ne.s32.totalorder %s668_s10, %s457_s21  ;;  %p459_p5 = pneg %p674_p0 }
  0x18   : > { %s462_s25 = scalar_lea.hbm %s790_s0, 256  ;;  %p463_p4 = scmp.lt.u32.totalorder %s668_s10, %s790_s0 }
  0x19   : > { %p460_p6 = pnand %p459_p5, %p458_p3  ;;  %p464_p10 = scmp.lt.u32.totalorder %s462_s25, %s457_s21 }
  0x1a   : > { %p466_p12 = scmp.lt.u32.totalorder %s457_s21, %s668_s10 }
  0x1b   : > { %p461_p7 = pneg %p460_p6  ;;  %p465_p13 = por %p464_p10, %p463_p4 }
  0x1d   : > { %p467_p1 = por %p466_p12, %p465_p13 }
  0x1f   : > { %p468_p2 = pnand %p467_p1, %p461_p7 }
  0x21   : > { %471 = shalt.err (!%p468_p2)
}
  0x22   : > { %s472_s5 = scalar_lea.vmem %s670_s12, 128  ;;  %s571_s7 = smov [#allocation2]  }
  0x23   : > { %p473_p3 = scmp.ne.s32.totalorder %s670_s12, %s472_s5  ;;  %s477_s8 = sshll.u32 %s571_s7, 4  ;;  %s478_s8 = int_to_ptr.vmem [resolvable:$false] %s477_s8 }
  0x24   : > { %s479_s9 = scalar_lea.vmem %s478_s8, 256  ;;  %p480_p9 = scmp.lt.s32.totalorder %s670_s12, %s478_s8 }
  0x25   : > { %p475_p6 = pnand %p473_p3, %p459_p5  ;;  %p481_p4 = scmp.lt.s32.totalorder %s479_s9, %s472_s5 }
  0x27   : > { %p476_p11 = pneg %p475_p6  ;;  %p482_p10 = por %p481_p4, %p480_p9 }
  0x29   : > { %p483_p12 = pnand %p482_p10, %p476_p11 }
  0x2b   : > { %486 = shalt.err (!%p483_p12)
}
  0x2c   : > { %399 = dma.hbm_to_vmem [thread:$0]  (!%p674_p0), %s668_s10, 128, %s670_s12, %s179_s14  }
  0x2d   : > { %p801_p1 = scmp.lt.s32.totalorder %s569_s20, 3  ;;  %p802_p2 = scmp.ge.s32.totalorder %s569_s20, 1 }
  0x2f   : > { %p196_p5 = pnand %p802_p2, %p801_p1 }
  0x30   : > { %s710_s11 = sand.u32 (!%p196_p5), 1, %s553_s16  }
  0x31   : > { %199 = sbr.rel (%p196_p5) target bundleno = 114 (0x72), region = 36  ;;  %s386_s21 = sshll.u32 (!%p196_p5), %s710_s11, 3 }
  0x32   : > { %s202_s22 = scalar_lea.sflag (!%p196_p5), [#allocation3], %s710_s11  ;;  %s716_s13 = scalar_lea.vmem (!%p196_p5), [#allocation2], %s386_s21 }
  0x38   : > { %540 = dma.done.wait (%p646_p8), %s202_s22, 128  }
  0x39   : > { %542 = vsyncadd (%p646_p8), %s202_s22, 4294967168  ;;  %vm232_vm0 = vcmask 254976   ;;  %v230_v0 = vld [vmem:[%s791_s1] sm:$0x3]  ;;  %v231_v1 = vld [vmem:[%s791_s1 + $0x2] sm:$0x3]  ;;  %v250_v13 = vlaneseq }
  0x3a   : > { %v233_v2 = vsel %vm232_vm0, %v230_v0, 0.0  ;;  %v234_v3 = vsel %vm232_vm0, %v231_v1, 0.0  ;;  %v572_v11 = vmov 1966171168   ;;  %v243_v20 = vld [vmem:[%s792_s2] sm:$0x1] }
  0x3b   : > { %v235_v4 = vadd.f32 %v234_v3, %v233_v2  ;;  %v248_v12 = vunpack.c.l.s4 %v572_v11  ;;  %v251_v15 = vshrl.u32 %v250_v13, 7  ;;  %v264_v24 = vld [vmem:[%s793_s3] sm:$0x1]  ;;  %s229_s5 = scalar_lea.vmem [#allocation5], %s386_s21  ;;  %s389_s8 = sshll.u32 %s561_s18, 7  ;;  %vm282_vm1 = vcmask 261120  }
  0x3c   : > { %v267_v25 = vld [vmem:[%s716_s13] sm:$0xff]  ;;  %s299_s7 = sshll.u32 %s229_s5, 4  ;;  %s743_s13 = scalar_lea.hbm %s794_s4, %s389_s8  ;;  %s738_s7 = int_to_ptr.vmem [resolvable:$true] %s299_s7 }
  0x3d   : > { %v236_v5 = vmul.f32 0.0625, %v235_v4  ;;  %v249_v14 = vunpack.c.0.s8 %v248_v12  ;;  %v271_v22 = vsub.s32 0, %v251_v15  ;;  %s285_s10 = scalar_lea.sflag [#allocation4], %s710_s11  ;;  %s487_s12 = scalar_lea.vmem %s738_s7, 128 }
  0x3e   : > { %p488_p8 = scmp.ne.s32.totalorder %s738_s7, %s487_s12  ;;  %p803_p9 = scmp.ne.s32.totalorder %s798_s28, 0 }
  0x3f   : > { %v237_v6 = vmul.f32 %v236_v5, %v236_v5  ;;  %v252_v16 = vsub.s32 %v249_v14, %v251_v15  ;;  %s573_s18 = smov [#allocation5]  }
  0x40   : > { %p489_p11 = pnand %p488_p8, %p803_p9  ;;  %s491_s21 = sshll.u32 %s573_s18, 4  ;;  %s492_s21 = int_to_ptr.vmem [resolvable:$false] %s491_s21 }
  0x41   : > { %v239_v7 = vrot.slane %v237_v6, 7  ;;  %s493_s14 = scalar_lea.vmem %s492_s21, 256  ;;  %p494_p7 = scmp.lt.s32.totalorder %s738_s7, %s492_s21 }
  0x42   : > { %p490_p0 = pneg %p489_p11  ;;  %p495_p13 = scmp.lt.s32.totalorder %s493_s14, %s487_s12 }
  0x43   : > { %v241_v8 = vsub.f32 %v236_v5, %v239_v7 }
  0x44   : > { %p496_p3 = por %p495_p13, %p494_p7 }
  0x45   : > { %v242_v9 = vmax.f32 %v241_v8, 0.0 }
  0x46   : > { %p497_p6 = pnand %p496_p3, %p490_p0 }
  0x47   : > { %v244_v10 = vadd.f32 1e-05, %v242_v9 }
  0x49   : > { %455 = vrsqrt.f32 %v244_v10 }
  0x53   : > { %v456_v17 = vpop.eup %455 }
  0x54   : > { %v253_v18 = vrot.slane %v456_v17, %v252_v16 }
  0x56   : > { %v254_v19 = vcombine.high %v253_v18, %v253_v18 }
  0x58   : > { %v261_v21 = vrot.slane %v254_v19, %v252_v16 }
  0x5a   : > { %v263_v23 = vmul.f32 %v261_v21, %v243_v20 }
  0x5c   : > { %v265_v26 = vmul.f32 %v263_v23, %v236_v5  ;;  %v272_v27 = vrot.slane %v263_v23, %v271_v22 }
  0x5e   : > { %v266_v28 = vsub.f32 %v264_v24, %v265_v26  ;;  %v274_v29 = vmul.f32 %v272_v27, %v267_v25 }
  0x60   : > { %v279_v30 = vrot.slane %v266_v28, %v271_v22 }
  0x62   : > { %v281_v31 = vadd.f32 %v279_v30, %v274_v29 }
  0x64   : > { %283 = vst.msk [vmem:[%s229_s5] sm:$0xff] %vm282_vm1, %v281_v31 }
  0x65   : > { %500 = shalt.err (!%p497_p6)
}
  0x66   : > { %s501_s11 = scalar_lea.hbm %s743_s13, 128  ;;  %s505_s25 = scalar_lea.hbm %s794_s4, 256 }
  0x67   : > { %p502_p4 = scmp.ne.s32.totalorder %s743_s13, %s501_s11  ;;  %p506_p1 = scmp.lt.u32.totalorder %s743_s13, %s794_s4 }
  0x68   : > { %p507_p2 = scmp.lt.u32.totalorder %s505_s25, %s501_s11  ;;  %p509_p8 = scmp.lt.u32.totalorder %s501_s11, %s743_s13 }
  0x69   : > { %p503_p10 = pnand %p502_p4, %p803_p9 }
  0x6a   : > { %p508_p5 = por %p507_p2, %p506_p1 }
  0x6b   : > { %p504_p12 = pneg %p503_p10 }
  0x6c   : > { %p510_p11 = por %p509_p8, %p508_p5 }
  0x6e   : > { %p511_p0 = pnand %p510_p11, %p504_p12 }
  0x70   : > { %514 = shalt.err (!%p511_p0)
}
  0x71   : > { %394 = dma.vmem_to_hbm [thread:$0]  (%p803_p9), %s738_s7, 128, %s743_s13, %s285_s10  }
  0x72 PF: > { %s311_s5 = sand.u32 1, %s549_s15   ;;  %p804_p7 = scmp.ne.s32.totalorder %s799_s30, 0 }
  0x73   : > { %p805_p13 = scmp.ge.s32.totalorder %s569_s20, 2  ;;  %s312_s8 = scalar_lea.sflag [#allocation4], %s311_s5 }
  0x75   : > { %p401_p3 = pnand %p805_p13, %p804_p7 }
  0x77   : > { %544 = dma.done.wait (!%p401_p3), %s312_s8, 128  }
  0x78   : > { %546 = vsyncadd (!%p401_p3), %s312_s8, 4294967168  ;;  %s20_s20 = sadd.s32 1, %s569_s20   ;;  %s806_s15 = smov %s553_s16 }
  0x79   : > { %p17_p6 = scmp.ge.s32.totalorder %s20_s20, 4   ;;  %s807_s16 = smov %s557_s17 }
  0x7a   : > { %s808_s17 = smov %s655_s29  ;;  %s809_s18 = smov %s565_s19 }
  0x7b   : > { %s810_s19 = smov %s812_s23  ;;  %19 = sbr.rel (!%p17_p6) target bundleno = 6 (0x6), region = 81 }
  0x82   :  { %317 = vsyncpa [#allocation3], 1 }
  0x83   :  { %319 = vsyncpa [#allocation3 + $0x1], 1 }
  0x84   :  { %320 = vsyncpa [#allocation4], 1 }
  0x85   :  { %322 = vsyncpa [#allocation4 + $0x1], 1 }

// kernel: gconv_pallas.2
= control target key start
LH: loop header
LB: loop body
LE: loop exit
PB: predicated region body
PF: predicated region fallthrough
CT: control target
= control target key end

     0   :  { %10 = vsyncpa [#allocation3], 0  ;;  %s1074_s0 = inlined_call_operand.vmem [shape: f32[2,2,8,8], index: 0, kind: input, shape index: {}]   ;;  %s1075_s1 = inlined_call_operand.vmem [shape: f32[2,8,4], index: 1, kind: input, shape index: {}]   ;;  %s1076_s2 = inlined_call_operand.vmem [shape: f32[2,4,32], index: 2, kind: input, shape index: {}]   ;;  %s1077_s3 = inlined_call_operand.hbm [shape: f32[2,8,32], index: 3, kind: output, shape index: {0}]   ;;  %s1078_s4 = inlined_call_operand.vmem [shape: f32[2,2,32], index: 4, kind: output, shape index: {1}]  }
   0x1   :  { %12 = vsyncpa [#allocation3 + $0x1], 0  ;;  %s936_s15 = smov 0   ;;  %s938_s16 = smov 0  }
   0x2   :  { %s940_s17 = smov 0   ;;  %s942_s18 = smov 0  }
   0x3   :  { %s944_s19 = smov 0   ;;  %s946_s20 = smov 0  }
   0x4 LB: > { %s718_s21 = sadd.s32 4294967295, %s906_s20   ;;  %s719_s22 = sadd.s32 4294967294, %s906_s20   ;;  %s906_s20 = sphi %s946_s20, %s18_s20   ;;  %s902_s19 = sphi %s944_s19, %s1085_s19   ;;  %s898_s18 = sphi %s942_s18, %s1084_s18   ;;  %s894_s17 = sphi %s940_s17, %s1083_s17   ;;  %s890_s16 = sphi %s938_s16, %s1082_s16   ;;  %s886_s15 = sphi %s936_s15, %s1081_s15  }
   0x5   : > { %s30_s23 = sadd.s32 1, %s902_s19  ;;  %s114_s24 = sadd.s32 1, %s894_s17 }
   0x6   : > { %p32_p0 = scmp.ge.s32.totalorder %s30_s23, 2  ;;  %p124_p1 = scmp.ne.s32.totalorder %s894_s17, %s890_s16 }
   0x7   : > { %p125_p2 = scmp.eq.s32.totalorder %s718_s21, 1  ;;  %p130_p3 = scmp.ne.s32.totalorder %s890_s16, %s886_s15 }
   0x8   : > { %s1087_s23 = smov (%p32_p0, %s30_s23), 0  ;;  %p131_p5 = scmp.eq.s32.totalorder %s719_s22, 1 }
   0x9   : > { %p976_p4 = por %p125_p2, %p124_p1  ;;  %s109_s26 = ssub.s32 %s902_s19, %s1087_s23 }
   0xa   : > { %p722_p6 = scmp.ge.s32.totalorder %s906_s20, 1  ;;  %p112_p7 = scmp.eq.s32.totalorder %s109_s26, 0 }
   0xb   : > { %p983_p8 = por %p131_p5, %p130_p3  ;;  %p196_p9 = scmp.lt.s32.totalorder %s906_s20, 3 }
   0xc   : > { %s989_s28 = scalar_select %p112_p7, %s894_s17, %s114_s24  }
   0xd   : > { %p197_p10 = pnand %p722_p6, %p196_p9 }
   0xe   : > { %p233_p11 = scmp.lt.s32.totalorder (!%p197_p10), %s898_s18, 1  ;;  %v908_v0 = vmov (!%p197_p10), 0.0   ;;  %vm909_vm0 = vmmov (!%p197_p10), 0   ;;  %vm563_vm1 = vcmask (!%p197_p10), 254976   ;;  %vm251_vm2 = vcmask (!%p197_p10), 64512   ;;  %s737_s6 = sshll.u32 (!%p197_p10), %s898_s18, 7 }
   0xf   : > { %200 = sbr.rel (%p197_p10) target bundleno = 496 (0x1f0), region = 32  ;;  %749 = vmatprep.subr.mxu1 (!%p197_p10), %v908_v0  ;;  %751 = vmatprep.mubr.msk.f32.mxu1 (!%p197_p10), %vm909_vm0, %v908_v0  ;;  %v731_v4 = vld [vmem:[%s1076_s2 + $0x4] sm:$0xf] (!%p197_p10)  ;;  %vm407_vm3 = vcmask (!%p197_p10), 1043456   ;;  %vm403_vm4 = vcmask (!%p197_p10), 31744   ;;  %vm557_vm5 = vcmask (!%p197_p10), 261120  }
  0x10   : > { %759 = vmatprep.subr.mxu0 (!%p197_p10), %v908_v0  ;;  %761 = vmatprep.mubr.msk.f32.mxu0 (!%p197_p10), %vm909_vm0, %v908_v0  ;;  %v325_v7 = vld [vmem:[%s1076_s2] sm:$0xf] (!%p197_p10)  ;;  %s910_s14 = smov (!%p197_p10), [#allocation2]  }
  0x11   : > { %760 = vmatpush3.msk.msra.mxu0 (!%p197_p10), %vm407_vm3, %v731_v4 }
  0x12   : > { %764 = vmatprep.subr.mxu0 (!%p197_p10), %v908_v0 }
  0x16   : > { %s234_s29 = scalar_select %p233_p11, %s898_s18, 1 }
  0x18   : > { %s726_s30 = sshll.u32 %s234_s29, 3  ;;  %s727_s5 = sshll.u32 %s234_s29, 1 }
  0x19   : > { %s244_s8 = scalar_lea.vmem %s1075_s1, %s726_s30  ;;  %s1001_s11 = scalar_lea.vmem %s1078_s4, %s727_s5 }
  0x1a   : > { %v249_v1 = vld [vmem:[%s244_s8] sm:$0xff]  ;;  %564 = vst.msk [vmem:[%s1001_s11] sm:$0x3] %vm563_vm1, %v908_v0  ;;  %s740_s12 = sshll.u32 %s234_s29, 4  ;;  %s224_s30 = sand.u32 1, %s890_s16  }
  0x1b   : > { %750 = vmatpush3.msra.mxu1 %v249_v1  ;;  %s240_s21 = scalar_lea.vmem %s1074_s0, %s740_s12  ;;  %s723_s5 = sshll.u32 %s224_s30, 3 }
  0x1c   : > { %v250_v2 = vld [vmem:[%s240_s21] sm:$0xff]  ;;  %754 = vmatprep.subr.mxu1 %v908_v0  ;;  %v729_v3 = vld [vmem:[%s240_s21 + $0x8] sm:$0xff]  ;;  %s226_s7 = scalar_lea.vmem [#allocation2], %s723_s5  ;;  %s1021_s12 = scalar_lea.hbm %s1077_s3, %s737_s6 }
  0x1d   : > { %752 = vmatmul.mubr.msk.f32.vlgmr.msra.gmra.mrb[0].mxu1 %vm251_vm2, %v250_v2  ;;  %s605_s8 = sshll.u32 %s226_s7, 4  ;;  %s587_s18 = scalar_lea.sflag [#allocation3], %s224_s30  ;;  %s1023_s8 = int_to_ptr.vmem [resolvable:$true] %s605_s8 }
  0x1e   : > { %755 = vmatpush3.msra.mxu1 %v249_v1  ;;  %756 = vmatprep.mubr.msk.f32.mxu1 %vm909_vm0, %v908_v0  ;;  %s828_s13 = scalar_lea.vmem %s1023_s8, 128  ;;  %s832_s21 = sshll.u32 %s910_s14, 4  ;;  %s833_s21 = int_to_ptr.vmem [resolvable:$false] %s832_s21 }
  0x1f   : > { %p829_p12 = scmp.ne.s32.totalorder %s1023_s8, %s828_s13  ;;  %s834_s22 = scalar_lea.vmem %s833_s21, 256 }
  0x20   : > { %p835_p1 = scmp.lt.s32.totalorder %s1023_s8, %s833_s21  ;;  %p836_p2 = scmp.lt.s32.totalorder %s834_s22, %s828_s13 }
  0x21   : > { %757 = vmatmul.mubr.msk.f32.vlgmr.msra.gmra.mrb[2].mxu1 %vm251_vm2, %v729_v3  ;;  %p830_p13 = pnand %p829_p12, %p976_p4 }
  0x22   : > { %p837_p3 = por %p836_p2, %p835_p1 }
  0x23   : > { %p831_p0 = pneg %p830_p13 }
  0x25   : > { %p838_p5 = pnand %p837_p3, %p831_p0 }
  0xf0   : > { %v321_v5 = vpop.f32.mrb[0].mxu1 }
  0xf1   : > { %v753_v6 = vpop.f32.mrb[1].mxu1 }
  0xf4   : > { %v397_v8 = vpop.f32.mrb[2].mxu1 }
  0xf5   : > { %v758_v9 = vpop.f32.mrb[3].mxu1  ;;  %762 = vmatmul.mubr.msk.f32.vlgmr.msra.gmra.mrb[0].mxu0 %vm403_vm4, %v397_v8 }
  0xf6   : > { %765 = vmatpush3.msk.msra.mxu0 %vm407_vm3, %v325_v7  ;;  %766 = vmatprep.mubr.msk.f32.mxu0 %vm909_vm0, %v908_v0 }
  0xfd   : > { %767 = vmatmul.mubr.msk.f32.vlgmr.msra.gmra.mrb[0].mxu0 %vm403_vm4, %v321_v5 }
 0x1d0   : > { %v553_v10 = vpop.f32.mrb[0].mxu0 }
 0x1d1   : > { %v565_v11 = vsel %vm557_vm5, %v553_v10, 0.0  ;;  %v572_v12 = vmul.f32 %v553_v10, %v553_v10  ;;  %v768_v13 = vpop.f32.mrb[1].mxu0  ;;  %558 = vst.msk [vmem:[%s226_s7] sm:$0xff] %vm557_vm5, %v553_v10 }
 0x1d2   : > { %v566_v14 = vrot.slane %v565_v11, 4 }
 0x1d3   : > { %841 = shalt.err (!%p838_p5)
}
 0x1d4   : > { %s842_s24 = scalar_lea.hbm %s1021_s12, 128  ;;  %s846_s30 = scalar_lea.hbm %s1077_s3, 256 }
 0x1d5   : > { %p843_p6 = scmp.ne.s32.totalorder %s1021_s12, %s842_s24  ;;  %p847_p10 = scmp.lt.u32.totalorder %s1021_s12, %s1077_s3 }
 0x1d6   : > { %p848_p11 = scmp.lt.u32.totalorder %s846_s30, %s842_s24  ;;  %p850_p13 = scmp.lt.u32.totalorder %s842_s24, %s1021_s12 }
 0x1d7   : > { %p844_p7 = pnand %p843_p6, %p976_p4 }
 0x1d8   : > { %p849_p12 = por %p848_p11, %p847_p10 }
 0x1d9   : > { %p845_p9 = pneg %p844_p7 }
 0x1da   : > { %p851_p0 = por %p850_p13, %p849_p12 }
 0x1dc   : > { %p852_p1 = pnand %p851_p0, %p845_p9 }
 0x1de   : > { %855 = shalt.err (!%p852_p1)
}
 0x1df   : > { %771 = dma.vmem_to_hbm [thread:$0]  (%p976_p4), %s1023_s8, 128, %s1021_s12, %s587_s18   ;;  %v573_v15 = vsel %vm557_vm5, %v572_v12, 0.0  ;;  %v567_v16 = vadd.f32 %v566_v14, %v565_v11  ;;  %vm580_vm6 = vcmask 1040384   ;;  %v582_v25 = vld [vmem:[%s1001_s11] sm:$0x3] }
 0x1e0   : > { %v574_v17 = vrot.slane %v573_v15, 4 }
 0x1e1   : > { %v568_v18 = vrot.slane %v567_v16, 2 }
 0x1e2   : > { %v575_v19 = vadd.f32 %v574_v17, %v573_v15 }
 0x1e3   : > { %v569_v20 = vadd.f32 %v568_v18, %v567_v16 }
 0x1e4   : > { %v576_v21 = vrot.slane %v575_v19, 2 }
 0x1e5   : > { %v570_v22 = vrot.slane %v569_v20, 1 }
 0x1e6   : > { %v577_v23 = vadd.f32 %v576_v21, %v575_v19 }
 0x1e7   : > { %v571_v26 = vadd.f32 %v570_v22, %v569_v20 }
 0x1e8   : > { %v578_v24 = vrot.slane %v577_v23, 1 }
 0x1ea   : > { %v579_v27 = vadd.f32 %v578_v24, %v577_v23 }
 0x1ec   : > { %v581_v28 = vsel %vm580_vm6, %v571_v26, %v579_v27 }
 0x1ed   : > { %v583_v29 = vadd.f32 %v582_v25, %v581_v28 }
 0x1ef   : > { %585 = vst.msk [vmem:[%s1001_s11] sm:$0x3] %vm563_vm1, %v583_v29 }
 0x1f0 PF: > { %p777_p4 = scmp.ge.s32.totalorder %s906_s20, 2  ;;  %s620_s25 = sand.u32 1, %s886_s15  }
 0x1f1   : > { %s621_s7 = scalar_lea.sflag [#allocation3], %s620_s25 }
 0x1f2   : > { %p774_p2 = pnand %p777_p4, %p983_p8 }
 0x1f4   : > { %881 = dma.done.wait (!%p774_p2), %s621_s7, 128  }
 0x1f5   : > { %883 = vsyncadd (!%p774_p2), %s621_s7, 4294967168  ;;  %s18_s20 = sadd.s32 1, %s906_s20   ;;  %s1081_s15 = smov %s890_s16 }
 0x1f6   : > { %p15_p3 = scmp.ge.s32.totalorder %s18_s20, 4   ;;  %s1082_s16 = smov %s894_s17 }
 0x1f7   : > { %s1083_s17 = smov %s989_s28  ;;  %s1084_s18 = smov %s902_s19 }
 0x1f8   : > { %s1085_s19 = smov %s1087_s23  ;;  %17 = sbr.rel (!%p15_p3) target bundleno = 4 (0x4), region = 88 }
 0x1ff   :  { %633 = vsyncpa [#allocation3], 1 }
 0x200   :  { %635 = vsyncpa [#allocation3 + $0x1], 1 }

</bundles_post_ra>
